<compile_context>
chip_gen: v5e
topology: v5e:2x2
jax: 0.10.0
libtpu: 0.0.40
codegen_flags: <defaults>
</compile_context>

<pallas_src>
import functools

import jax
import jax.numpy as jnp
from jax.experimental import pallas as pl
from jax.experimental.pallas import tpu as pltpu


def _act_log_kernel(x_ref, o_ref, *, eps):
    x = x_ref[...]
    # clamp(x, min=eps) on VPU, log on EUP
    o_ref[...] = jnp.log(jnp.maximum(x, jnp.asarray(eps, x.dtype)))


def _choose_lane(total):
    """Widest 128-multiple lane width dividing `total`, preferring >= 8 rows."""
    candidates = (4096, 2048, 1024, 512, 256, 128)
    divisors = [c for c in candidates if total % c == 0]
    for c in divisors:
        if total // c >= 8:
            return c
    if divisors:
        return divisors[0]
    return None


def act_log(x, eps=1e-6):
    """Elementwise log(clamp(x, min=eps)) matching torch semantics."""
    orig_shape = x.shape
    dtype = x.dtype
    total = x.size
    itemsize = jnp.dtype(dtype).itemsize

    lane = _choose_lane(total)
    if lane is not None:
        # Zero-copy reshape to a lane-dense slab (no pad, no concat, no slice).
        x2d = x.reshape(total // lane, lane)
    else:
        # Ragged fallback: keep the natural last dim (full-extent lane block);
        # the last row-block is partially OOB -> reads garbage, computes log of
        # it (no FP traps on TPU), and the store is masked. No padding copies.
        lane = orig_shape[-1] if x.ndim else 1
        x2d = x.reshape(-1, lane)
    rows = x2d.shape[0]

    # ~2 MiB blocks: big enough to amortize the ~0.35us per-grid-step overhead
    # (>=85% of HBM roofline for f32 elementwise), small enough that
    # (in + out) x double-buffering fits default scoped VMEM on v5e (16 MiB)
    # and leaves headroom on v7x's 64 MiB physical VMEM.
    target_block_bytes = 2 * 1024 * 1024
    rows_per_block = max(8, (target_block_bytes // (lane * itemsize)) // 8 * 8)
    if rows <= rows_per_block:
        tile_rows = rows            # single full-extent block
    else:
        tile_rows = rows_per_block  # multiple of 8 -> satisfies (8,128) tiling

    grid = (pl.cdiv(rows, tile_rows),)

    out2d = pl.pallas_call(
        functools.partial(_act_log_kernel, eps=eps),
        out_shape=jax.ShapeDtypeStruct((rows, lane), dtype),
        grid_spec=pltpu.PrefetchScalarGridSpec(
            num_scalar_prefetch=0,
            grid=grid,
            in_specs=[pl.BlockSpec((tile_rows, lane), lambda i: (i, 0))],
            out_specs=pl.BlockSpec((tile_rows, lane), lambda i: (i, 0)),
        ),
        compiler_params=pltpu.CompilerParams(
            dimension_semantics=("parallel",),
        ),
        cost_estimate=pl.CostEstimate(
            flops=total,
            transcendentals=total,
            bytes_accessed=2 * total * itemsize,
        ),
    )(x2d)

    return out2d.reshape(orig_shape)


if __name__ == "__main__":
    key = jax.random.PRNGKey(0)
    # NCHW input, small shapes (as the PyTorch module would see)
    x = jax.random.normal(key, (2, 4, 16, 16), dtype=jnp.float32)

    eps = 1e-6
    y = jax.block_until_ready(act_log(x, eps=eps))

    # reference check in plain JAX (clamp(min=eps) == maximum(x, eps))
    y_ref = jnp.log(jnp.maximum(x, eps))
    assert y.shape == x.shape and y.dtype == x.dtype
    assert jnp.allclose(y, y_ref, rtol=1e-6, atol=1e-6), "mismatch vs reference"

    print("KERNEL_OK")
</pallas_src>

<mosaic_0001>
module attributes {stable_mosaic.version = 11 : i64} {
  func.func @_act_log_kernel(%arg0: i32, %arg1: memref<8x256xf32, #tpu.memory_space<vmem>>, %arg2: memref<8x256xf32, #tpu.memory_space<vmem>>) attributes {dimension_semantics = [#tpu.dimension_semantics<parallel>], iteration_bounds = array<i64: 1>, scalar_prefetch = 0 : i64, scratch_operands = 0 : i64, tpu.core_type = #tpu.core_type<tc>, window_params = [{transform_indices = @transform_0, window_bounds = array<i64: 8, 256>}, {transform_indices = @transform_1, window_bounds = array<i64: 8, 256>}]} {
    %c0 = arith.constant 0 : index
    %c0_0 = arith.constant 0 : index
    %0 = vector.load %arg1[%c0, %c0_0] : memref<8x256xf32, #tpu.memory_space<vmem>>, vector<8x256xf32>
    %cst = arith.constant 9.99999997E-7 : f32
    %1 = vector.broadcast %cst : f32 to vector<8x256xf32>
    %2 = arith.maximumf %0, %1 : vector<8x256xf32>
    %3 = math.log %2 : vector<8x256xf32>
    %c0_1 = arith.constant 0 : index
    %c0_2 = arith.constant 0 : index
    %4 = vector.load %arg2[%c0_1, %c0_2] : memref<8x256xf32, #tpu.memory_space<vmem>>, vector<8x256xf32>
    tpu.vector_store %arg2[%c0_1, %c0_2], %3 {strides = array<i32>} : memref<8x256xf32, #tpu.memory_space<vmem>>, vector<8x256xf32>,
    return
  }
  func.func @transform_0(%arg0: i32) -> (i32, i32) {
    %c0_i32 = arith.constant 0 : i32
    %c0_i32_0 = arith.constant 0 : i32
    return %arg0, %c0_i32 : i32, i32
  }
  func.func @transform_1(%arg0: i32) -> (i32, i32) {
    %c0_i32 = arith.constant 0 : i32
    %c0_i32_0 = arith.constant 0 : i32
    return %arg0, %c0_i32 : i32, i32
  }
}

</mosaic_0001>

<bundles_post_ra>
// kernel: tpu_custom_call.1
= control target key start
LH: loop header
LB: loop body
LE: loop exit
PB: predicated region body
PF: predicated region fallthrough
CT: control target
= control target key end

     0   :  { %6 = vsyncpa [#allocation3], 0  ;;  %s126_s0 = inlined_call_operand.hbm [shape: f32[8,256], index: 0, kind: input, shape index: {}]   ;;  %s127_s1 = inlined_call_operand.hbm [shape: f32[8,256], index: 1, kind: output, shape index: {}]  }
   0x1   :  { %7 = vsyncpa [#allocation4], 0  ;;  %s13_s8 = sshll.u32 %s126_s0, 4  ;;  %s108_s9 = smov [#allocation2]   ;;  %s14_s8 = int_to_ptr.hbm [resolvable:$true] %s13_s8 }
   0x2   :  { %s15_s10 = sshll.u32 %s108_s9, 4  ;;  %s16_s10 = int_to_ptr.vmem [resolvable:$true] %s15_s10 }
   0x3   :  { %18 = dma.hbm_to_vmem [thread:$0]  %s14_s8, 256, %s16_s10, [#allocation3]  }
   0x4   :  { %104 = dma.done.wait [#allocation3], 256  }
   0x5   :  { %105 = vsyncadd [#allocation3], 4294967040  ;;  %v23_v0 = vld [vmem:[#allocation2] sm:$0xff]  ;;  %v24_v1 = vld [vmem:[#allocation2 + $0x8] sm:$0xff]  ;;  %s109_s11 = smov [#allocation5]   ;;  %s40_s15 = sshll.u32 %s127_s1, 4  ;;  %s41_s15 = int_to_ptr.hbm [resolvable:$true] %s40_s15 }
   0x6   :  { %v25_v2 = vmax.f32 %v23_v0, 1e-06  ;;  %v26_v3 = vmax.f32 %v24_v1, 1e-06  ;;  %s38_s12 = sshll.u32 %s109_s11, 4  ;;  %s39_s12 = int_to_ptr.vmem [resolvable:$true] %s38_s12 }
   0x8   :  { %52 = vlog2.f32 %v25_v2 }
   0x9   :  { %54 = vlog2.f32 %v26_v3 }
   0xe   :  { %v53_v4 = vpop.eup %52 }
   0xf   :  { %v55_v5 = vpop.eup %54  ;;  %v28_v6 = vmul.f32 0.6931472, %v53_v4 }
  0x10   :  { %v30_v7 = vmul.f32 0.6931472, %v55_v5 }
  0x11   :  { %31 = vst [vmem:[#allocation5] sm:$0xff] %v28_v6 }
  0x12   :  { %32 = vst [vmem:[#allocation5 + $0x8] sm:$0xff] %v30_v7 }
  0x13   :  { %43 = dma.vmem_to_hbm [thread:$0]  %s39_s12, 256, %s41_s15, [#allocation4]  }
  0x14   :  { %106 = dma.done.wait [#allocation4], 256  }
  0x15   :  { %107 = vsyncadd [#allocation4], 4294967040 }
  0x16   :  { %48 = vsyncpa [#allocation3], 1 }
  0x17   :  { %49 = vsyncpa [#allocation4], 1 }

</bundles_post_ra>
